<compile_context>
chip_gen: v7x
topology: tpu7x:2x2x1
jax: 0.10.0
libtpu: 0.0.40
codegen_flags: <defaults>
</compile_context>

<pallas_src>
import math

import jax
import jax.numpy as jnp
from jax.experimental import pallas as pl
from jax.experimental.pallas import tpu as pltpu


_INV_SQRT2 = 1.0 / math.sqrt(2.0)


def _round_up(x, m):
    return ((x + m - 1) // m) * m


def _mlp_kernel(x_ref, w1_ref, b1_ref, w2_ref, b2_ref, o_ref, acc_ref):
    h_idx = pl.program_id(1)

    @pl.when(h_idx == 0)
    def _():
        acc_ref[...] = jnp.zeros_like(acc_ref)

    # fc1 partial: x_tile @ W1_tile^T  -> [tile_m, tile_h], f32 accumulation.
    # W1 is in PyTorch [H, Cin] layout; contracting the trailing dims folds
    # the transpose into the MXU op.
    h = jax.lax.dot_general(
        x_ref[...], w1_ref[...],
        dimension_numbers=(((1,), (1,)), ((), ())),
        preferred_element_type=jnp.float32)
    h = h + b1_ref[...]                                     # bias in f32
    # exact (erf-based) GELU, matching torch.nn.GELU(); kept in f32 (VPU/EUP).
    h = 0.5 * h * (1.0 + jax.lax.erf(h * _INV_SQRT2))
    # dropout(p=0.0) -> identity
    h = h.astype(w2_ref.dtype)                              # bf16 feed if requested

    # fc2 partial accumulation over the hidden dimension:
    #   acc += GELU(h_tile) @ W2[:, h_tile]^T   (W2 stored [Cout_pad, H]).
    acc_ref[...] += jax.lax.dot_general(
        h, w2_ref[...],
        dimension_numbers=(((1,), (1,)), ((), ())),
        preferred_element_type=jnp.float32)

    @pl.when(h_idx == pl.num_programs(1) - 1)
    def _():
        o_ref[...] = (acc_ref[...] + b2_ref[...]).astype(o_ref.dtype)


def mlp_pallas(x, w1, b1, w2, b2, *, tile_m=256, tile_h=512, compute_dtype=None):
    """Mlp forward.

    x : [..., Cin]           (any leading dims, e.g. [B, N, Cin])
    w1: [H, Cin],  b1: [H]   (PyTorch nn.Linear layout, NOT pre-transposed)
    w2: [Cout, H], b2: [Cout]
    compute_dtype: None -> use x.dtype for the matmul inputs;
                   jnp.bfloat16 -> bf16 MXU inputs, f32 accumulation & GELU.
    """
    *lead, Cin = x.shape
    H = w1.shape[0]
    Cout = w2.shape[0]
    M = math.prod(lead) if lead else 1

    out_dtype = x.dtype
    cdt = compute_dtype if compute_dtype is not None else x.dtype

    # --- token tiling: large tiles for MXU utilization, ragged-M safe -------
    tile_m = max(16, min(int(tile_m), _round_up(M, 16)))
    tile_m = _round_up(tile_m, 16)
    M_pad = _round_up(M, tile_m)

    # --- hidden (reduction) tiling: lane granularity 128 --------------------
    tile_h = max(128, min(int(tile_h), _round_up(H, 128)))
    tile_h = _round_up(tile_h, 128)
    H_pad = _round_up(H, tile_h)

    # --- lane-dense output: pad Cout up to a multiple of 128 ----------------
    Cout_pad = _round_up(Cout, 128)

    x2 = x.reshape(M, Cin).astype(cdt)
    if M_pad != M:
        x2 = jnp.pad(x2, ((0, M_pad - M), (0, 0)))

    w1c = w1.astype(cdt)                                    # [H, Cin]
    w2c = w2.astype(cdt)                                    # [Cout, H]
    b1p, b2p = b1, b2
    if H_pad != H:
        # Padded hidden units: W1 rows / b1 entries are zero -> GELU(0)=0,
        # and the matching W2 columns are zero, so they contribute nothing.
        w1c = jnp.pad(w1c, ((0, H_pad - H), (0, 0)))        # [H_pad, Cin]
        b1p = jnp.pad(b1, (0, H_pad - H))
        w2c = jnp.pad(w2c, ((0, 0), (0, H_pad - H)))        # [Cout, H_pad]
    if Cout_pad != Cout:
        w2c = jnp.pad(w2c, ((0, Cout_pad - Cout), (0, 0)))  # [Cout_pad, H_pad]
        b2p = jnp.pad(b2, (0, Cout_pad - Cout))
    # Biases stay f32: the accumulators they add into are f32 anyway.
    b1r = b1p.astype(jnp.float32).reshape(1, H_pad)
    b2r = b2p.astype(jnp.float32).reshape(1, Cout_pad)

    grid = (M_pad // tile_m, H_pad // tile_h)

    # --- scheduling hints ----------------------------------------------------
    itm = jnp.dtype(cdt).itemsize
    oitm = jnp.dtype(out_dtype).itemsize
    flops = 2 * M_pad * (Cin * H_pad + H_pad * Cout_pad)
    bytes_accessed = (M_pad * Cin * itm
                      + (H_pad * Cin + Cout_pad * H_pad) * itm
                      + (H_pad + Cout_pad) * 4
                      + M_pad * Cout_pad * oitm)
    cost = pl.CostEstimate(flops=flops,
                           transcendentals=M_pad * H_pad,
                           bytes_accessed=bytes_accessed)

    # VMEM estimate: double-buffered x / W1 / W2 / out tiles + biases +
    # f32 accumulator + f32 intermediates, with 2x headroom, capped at 64 MiB
    # (v7x physical per-TC VMEM).
    vmem_est = (2 * tile_m * Cin * itm                      # x tile (2 bufs)
                + 2 * tile_h * Cin * itm                    # W1 tile
                + 2 * Cout_pad * tile_h * itm               # W2 tile
                + 2 * (tile_h + Cout_pad) * 4               # biases
                + 2 * tile_m * Cout_pad * oitm              # out tile
                + tile_m * Cout_pad * 4                     # f32 accumulator
                + 2 * tile_m * tile_h * 4)                  # fc1/GELU intermediates
    vmem_limit = int(min(max(2 * vmem_est, 32 * 1024 * 1024), 64 * 1024 * 1024))

    out2 = pl.pallas_call(
        _mlp_kernel,
        out_shape=jax.ShapeDtypeStruct((M_pad, Cout_pad), out_dtype),
        grid_spec=pltpu.PrefetchScalarGridSpec(
            num_scalar_prefetch=0,
            grid=grid,
            in_specs=[
                pl.BlockSpec((tile_m, Cin),      lambda i, h: (i, 0)),  # x tile
                pl.BlockSpec((tile_h, Cin),      lambda i, h: (h, 0)),  # W1 slice
                pl.BlockSpec((1, tile_h),        lambda i, h: (0, h)),  # b1 slice
                pl.BlockSpec((Cout_pad, tile_h), lambda i, h: (0, h)),  # W2 slice
                pl.BlockSpec((1, Cout_pad),      lambda i, h: (0, 0)),  # b2
            ],
            out_specs=pl.BlockSpec((tile_m, Cout_pad), lambda i, h: (i, 0)),
            scratch_shapes=[pltpu.VMEM((tile_m, Cout_pad), jnp.float32)],
        ),
        compiler_params=pltpu.CompilerParams(
            dimension_semantics=("parallel", "arbitrary"),
            vmem_limit_bytes=vmem_limit),
        cost_estimate=cost,
    )(x2, w1c, b1r, w2c, b2r)

    out2 = out2[:M, :Cout]
    return out2.reshape(*lead, Cout)


def _init_params(key, in_features, hidden_features, out_features, dtype=jnp.float32):
    """Deterministic init mirroring nn.Linear's kaiming-uniform-ish ranges."""
    k1, k2, k3, k4 = jax.random.split(key, 4)
    lim1 = 1.0 / math.sqrt(in_features)
    lim2 = 1.0 / math.sqrt(hidden_features)
    w1 = jax.random.uniform(k1, (hidden_features, in_features), dtype, -lim1, lim1)
    b1 = jax.random.uniform(k2, (hidden_features,), dtype, -lim1, lim1)
    w2 = jax.random.uniform(k3, (out_features, hidden_features), dtype, -lim2, lim2)
    b2 = jax.random.uniform(k4, (out_features,), dtype, -lim2, lim2)
    return w1, b1, w2, b2


def _mlp_reference(x, w1, b1, w2, b2):
    h = x @ w1.T + b1
    h = 0.5 * h * (1.0 + jax.lax.erf(h / jnp.sqrt(2.0)))
    return h @ w2.T + b2


if __name__ == "__main__":
    # Small shapes consistent with the module: batch=2, seq=8 tokens,
    # in_features=32, hidden_features=128 (mlp_ratio=4), out_features=32.
    B, N = 2, 8
    in_features, hidden_features, out_features = 32, 128, 32

    key = jax.random.PRNGKey(0)
    kx, kp = jax.random.split(key)
    x = jax.random.normal(kx, (B, N, in_features), jnp.float32)
    w1, b1, w2, b2 = _init_params(kp, in_features, hidden_features, out_features)

    ref = _mlp_reference(x, w1, b1, w2, b2)

    # f32 path — strict check against the reference.
    out = jax.block_until_ready(mlp_pallas(x, w1, b1, w2, b2))
    assert out.shape == (B, N, out_features)
    assert jnp.allclose(out, ref, atol=1e-5, rtol=1e-5), "f32 mismatch vs reference"

    # bf16 matmul-input path (f32 accumulate + f32 GELU) — loose tolerance.
    out_bf16 = jax.block_until_ready(
        mlp_pallas(x, w1, b1, w2, b2, compute_dtype=jnp.bfloat16))
    assert out_bf16.shape == (B, N, out_features)
    assert jnp.allclose(out_bf16.astype(jnp.float32), ref, atol=7.5e-2, rtol=7.5e-2), \
        "bf16 mismatch vs reference"

    # Ragged token count (exercises the padded last tile + output slicing).
    xr = jax.random.normal(kx, (B, N + 1, in_features), jnp.float32)
    ref_r = _mlp_reference(xr, w1, b1, w2, b2)
    out_r = jax.block_until_ready(mlp_pallas(xr, w1, b1, w2, b2))
    assert out_r.shape == (B, N + 1, out_features)
    assert jnp.allclose(out_r, ref_r, atol=1e-5, rtol=1e-5), "ragged-M mismatch"

    # Multi-step hidden reduction (exercises the H grid axis + accumulator).
    hf2 = 384
    w1b, b1b, w2b, b2b = _init_params(kp, in_features, hf2, out_features)
    ref_h = _mlp_reference(x, w1b, b1b, w2b, b2b)
    out_h = jax.block_until_ready(
        mlp_pallas(x, w1b, b1b, w2b, b2b, tile_h=128))
    assert out_h.shape == (B, N, out_features)
    assert jnp.allclose(out_h, ref_h, atol=1e-5, rtol=1e-5), "H-reduction mismatch"

    print("KERNEL_OK")
</pallas_src>

<mosaic_0001>
module attributes {stable_mosaic.version = 11 : i64} {
  func.func @_mlp_kernel(%arg0: i32, %arg1: i32, %arg2: memref<16x32xf32, #tpu.memory_space<vmem>>, %arg3: memref<128x32xf32, #tpu.memory_space<vmem>>, %arg4: memref<1x128xf32, #tpu.memory_space<vmem>>, %arg5: memref<128x128xf32, #tpu.memory_space<vmem>>, %arg6: memref<1x128xf32, #tpu.memory_space<vmem>>, %arg7: memref<16x128xf32, #tpu.memory_space<vmem>>, %arg8: memref<16x128xf32, #tpu.memory_space<vmem>>) attributes {dimension_semantics = [#tpu.dimension_semantics<parallel>, #tpu.dimension_semantics<arbitrary>], iteration_bounds = array<i64: 1, 1>, scalar_prefetch = 0 : i64, scratch_operands = 1 : i64, tpu.core_type = #tpu.core_type<tc>, window_params = [{transform_indices = @transform_0, window_bounds = array<i64: 16, 32>}, {transform_indices = @transform_1, window_bounds = array<i64: 128, 32>}, {transform_indices = @transform_2, window_bounds = array<i64: 1, 128>}, {transform_indices = @transform_3, window_bounds = array<i64: 128, 128>}, {pipeline_mode = #tpu.pipeline_mode<synchronous>, transform_indices = @transform_4, window_bounds = array<i64: 1, 128>}, {transform_indices = @transform_5, window_bounds = array<i64: 16, 128>}]} {
    %c0_i32 = arith.constant 0 : i32
    %0 = arith.cmpi eq, %arg1, %c0_i32 : i32
    %1 = arith.extui %0 : i1 to i32
    %c0_i32_0 = arith.constant 0 : i32
    %2 = arith.cmpi ne, %1, %c0_i32_0 : i32
    scf.if %2 {
      %cst_18 = arith.constant 0.000000e+00 : f32
      %25 = vector.broadcast %cst_18 : f32 to vector<16x128xf32>
      %c0_19 = arith.constant 0 : index
      %c0_20 = arith.constant 0 : index
      %26 = vector.load %arg8[%c0_19, %c0_20] : memref<16x128xf32, #tpu.memory_space<vmem>>, vector<16x128xf32>
      tpu.vector_store %arg8[%c0_19, %c0_20], %25 {strides = array<i32>} : memref<16x128xf32, #tpu.memory_space<vmem>>, vector<16x128xf32>,
    } else {
    }
    %c0 = arith.constant 0 : index
    %c0_1 = arith.constant 0 : index
    %3 = vector.load %arg2[%c0, %c0_1] : memref<16x32xf32, #tpu.memory_space<vmem>>, vector<16x32xf32>
    %c0_2 = arith.constant 0 : index
    %c0_3 = arith.constant 0 : index
    %4 = vector.load %arg3[%c0_2, %c0_3] : memref<128x32xf32, #tpu.memory_space<vmem>>, vector<128x32xf32>
    %cst = arith.constant dense<0.000000e+00> : vector<16x128xf32>
    %5 = tpu.matmul %3, %4, %cst {dimension_numbers = #tpu.dot_dimension_numbers<[1], [1], [0], [0], [0, 0, 1, 0], [], []>} : vector<16x32xf32>, vector<128x32xf32>, vector<16x128xf32> -> vector<16x128xf32>
    %c0_4 = arith.constant 0 : index
    %c0_5 = arith.constant 0 : index
    %6 = vector.load %arg4[%c0_4, %c0_5] : memref<1x128xf32, #tpu.memory_space<vmem>>, vector<1x128xf32>
    %7 = vector.broadcast %6 : vector<1x128xf32> to vector<16x128xf32>
    %8 = arith.addf %5, %7 : vector<16x128xf32>
    %cst_6 = arith.constant 5.000000e-01 : f32
    %9 = vector.broadcast %cst_6 : f32 to vector<16x128xf32>
    %10 = arith.mulf %9, %8 : vector<16x128xf32>
    %cst_7 = arith.constant 0.707106769 : f32
    %11 = vector.broadcast %cst_7 : f32 to vector<16x128xf32>
    %12 = arith.mulf %8, %11 : vector<16x128xf32>
    %13 = math.erf %12 : vector<16x128xf32>
    %cst_8 = arith.constant 1.000000e+00 : f32
    %14 = vector.broadcast %cst_8 : f32 to vector<16x128xf32>
    %15 = arith.addf %14, %13 : vector<16x128xf32>
    %16 = arith.mulf %10, %15 : vector<16x128xf32>
    %c0_9 = arith.constant 0 : index
    %c0_10 = arith.constant 0 : index
    %17 = vector.load %arg8[%c0_9, %c0_10] : memref<16x128xf32, #tpu.memory_space<vmem>>, vector<16x128xf32>
    %c0_11 = arith.constant 0 : index
    %c0_12 = arith.constant 0 : index
    %18 = vector.load %arg5[%c0_11, %c0_12] : memref<128x128xf32, #tpu.memory_space<vmem>>, vector<128x128xf32>
    %cst_13 = arith.constant dense<0.000000e+00> : vector<16x128xf32>
    %19 = tpu.matmul %16, %18, %cst_13 {dimension_numbers = #tpu.dot_dimension_numbers<[1], [1], [0], [0], [0, 0, 1, 0], [], []>} : vector<16x128xf32>, vector<128x128xf32>, vector<16x128xf32> -> vector<16x128xf32>
    %20 = arith.addf %17, %19 : vector<16x128xf32>
    %c0_14 = arith.constant 0 : index
    %c0_15 = arith.constant 0 : index
    %21 = vector.load %arg8[%c0_14, %c0_15] : memref<16x128xf32, #tpu.memory_space<vmem>>, vector<16x128xf32>
    tpu.vector_store %arg8[%c0_14, %c0_15], %20 {strides = array<i32>} : memref<16x128xf32, #tpu.memory_space<vmem>>, vector<16x128xf32>,
    %c0_i32_16 = arith.constant 0 : i32
    %22 = arith.cmpi eq, %arg1, %c0_i32_16 : i32
    %23 = arith.extui %22 : i1 to i32
    %c0_i32_17 = arith.constant 0 : i32
    %24 = arith.cmpi ne, %23, %c0_i32_17 : i32
    scf.if %24 {
      %c0_18 = arith.constant 0 : index
      %c0_19 = arith.constant 0 : index
      %25 = vector.load %arg8[%c0_18, %c0_19] : memref<16x128xf32, #tpu.memory_space<vmem>>, vector<16x128xf32>
      %c0_20 = arith.constant 0 : index
      %c0_21 = arith.constant 0 : index
      %26 = vector.load %arg6[%c0_20, %c0_21] : memref<1x128xf32, #tpu.memory_space<vmem>>, vector<1x128xf32>
      %27 = vector.broadcast %26 : vector<1x128xf32> to vector<16x128xf32>
      %28 = arith.addf %25, %27 : vector<16x128xf32>
      %c0_22 = arith.constant 0 : index
      %c0_23 = arith.constant 0 : index
      %29 = vector.load %arg7[%c0_22, %c0_23] : memref<16x128xf32, #tpu.memory_space<vmem>>, vector<16x128xf32>
      tpu.vector_store %arg7[%c0_22, %c0_23], %28 {strides = array<i32>} : memref<16x128xf32, #tpu.memory_space<vmem>>, vector<16x128xf32>,
    } else {
    }
    return
  }
  func.func @transform_0(%arg0: i32, %arg1: i32) -> (i32, i32) {
    %c0_i32 = arith.constant 0 : i32
    %c0_i32_0 = arith.constant 0 : i32
    return %arg0, %c0_i32 : i32, i32
  }
  func.func @transform_1(%arg0: i32, %arg1: i32) -> (i32, i32) {
    %c0_i32 = arith.constant 0 : i32
    %c0_i32_0 = arith.constant 0 : i32
    return %arg1, %c0_i32 : i32, i32
  }
  func.func @transform_2(%arg0: i32, %arg1: i32) -> (i32, i32) {
    %c0_i32 = arith.constant 0 : i32
    %c0_i32_0 = arith.constant 0 : i32
    return %c0_i32, %arg1 : i32, i32
  }
  func.func @transform_3(%arg0: i32, %arg1: i32) -> (i32, i32) {
    %c0_i32 = arith.constant 0 : i32
    %c0_i32_0 = arith.constant 0 : i32
    return %c0_i32, %arg1 : i32, i32
  }
  func.func @transform_4(%arg0: i32, %arg1: i32) -> (i32, i32) {
    %c0_i32 = arith.constant 0 : i32
    %c0_i32_0 = arith.constant 0 : i32
    %c0_i32_1 = arith.constant 0 : i32
    return %c0_i32, %c0_i32_0 : i32, i32
  }
  func.func @transform_5(%arg0: i32, %arg1: i32) -> (i32, i32) {
    %c0_i32 = arith.constant 0 : i32
    %c0_i32_0 = arith.constant 0 : i32
    return %arg0, %c0_i32 : i32, i32
  }
}

</mosaic_0001>

<bundles_post_ra>
// kernel: tpu_custom_call.1
= control target key start
LH: loop header
LB: loop body
LE: loop exit
PB: predicated region body
PF: predicated region fallthrough
CT: control target
= control target key end

     0   :  { %vm52_vm0 = vcmask 261120   ;;  %s751_s0 = inlined_call_operand.vmem [shape: f32[16,32], index: 0, kind: input, shape index: {}]   ;;  %s752_s1 = inlined_call_operand.vmem [shape: f32[128,32], index: 1, kind: input, shape index: {}]   ;;  %s753_s2 = inlined_call_operand.vmem [shape: f32[1,128], index: 2, kind: input, shape index: {}]   ;;  %s754_s3 = inlined_call_operand.vmem [shape: f32[128,128], index: 3, kind: input, shape index: {}]   ;;  %s755_s4 = inlined_call_operand.vmem [shape: f32[1,128], index: 4, kind: input, shape index: {}]   ;;  %s756_s5 = inlined_call_operand.hbm [shape: f32[16,128], index: 5, kind: output, shape index: {}]  }
   0x1   :  { %v29_v0 = vld [vmem:[%s752_s1] sm:$0xff]  ;;  %v30_v1 = vld [vmem:[%s752_s1 + $0x8] sm:$0xff]  ;;  %v31_v2 = vld [vmem:[%s752_s1 + $0x10] sm:$0xff] }
   0x2   :  { %v447_v3 = vpack.c.bf16 %v30_v1, %v29_v0  ;;  %vm602_vm1 = vmpackc.low %vm52_vm0, %vm52_vm0  ;;  %v32_v5 = vld [vmem:[%s752_s1 + $0x18] sm:$0xff]  ;;  %v33_v7 = vld [vmem:[%s752_s1 + $0x20] sm:$0xff] }
   0x3   :  { %v453_v6 = vpack.c.bf16 %v32_v5, %v31_v2  ;;  %v27_v8 = vld [vmem:[%s751_s0] sm:$0xff]  ;;  %v34_v9 = vld [vmem:[%s752_s1 + $0x28] sm:$0xff]  ;;  %v196_v13 = vld [vmem:[%s754_s3 + $0x10] sm:$0xff] }
   0x4   :  { %449 = vmatprep.subr.msk.bf16.mxu0 %vm602_vm1, %v447_v3  ;;  %409 = vmatprep.mubr.msk.f32.mxu0 %vm52_vm0, %v27_v8  ;;  %v194_v10 = vld [vmem:[%s754_s3] sm:$0xff]  ;;  %v195_v11 = vld [vmem:[%s754_s3 + $0x8] sm:$0xff]  ;;  %v197_v14 = vld [vmem:[%s754_s3 + $0x18] sm:$0xff]  ;;  %v459_v16 = vpack.c.bf16 %v34_v9, %v33_v7 }
   0x5   :  { %452 = vmatpush3.bf16.xpose.msk.msra.mxu0 %vm602_vm1, %v447_v3  ;;  %v495_v12 = vpack.c.bf16 %v195_v11, %v194_v10  ;;  %v499_v15 = vpack.c.bf16 %v197_v14, %v196_v13 }
   0x6   :  { %455 = vmatprep.subr.msk.bf16.mxu0 %vm602_vm1, %v453_v6 }
   0x7   :  { %496 = vmatprep.subr.bf16.mxu1 %v495_v12 }
   0x8   :  { %498 = vmatpush3.bf16.xpose.msra.mxu1 %v495_v12 }
   0x9   :  { %10 = vsyncpa [#allocation4], 0  ;;  %500 = vmatprep.subr.bf16.mxu1 %v499_v15  ;;  %v198_v17 = vld [vmem:[%s754_s3 + $0x20] sm:$0xff]  ;;  %v199_v18 = vld [vmem:[%s754_s3 + $0x28] sm:$0xff]  ;;  %s558_s11 = smov [#allocation3]  }
   0xa   :  { %v35_v19 = vld [vmem:[%s752_s1 + $0x30] sm:$0xff]  ;;  %v36_v20 = vld [vmem:[%s752_s1 + $0x38] sm:$0xff]  ;;  %v503_v21 = vpack.c.bf16 %v199_v18, %v198_v17  ;;  %v37_v25 = vld [vmem:[%s752_s1 + $0x40] sm:$0xff]  ;;  %s310_s12 = sshll.u32 %s558_s11, 4  ;;  %s311_s12 = int_to_ptr.vmem [resolvable:$true] %s310_s12 }
   0xb   :  { %v465_v22 = vpack.c.bf16 %v36_v20, %v35_v19  ;;  %v200_v23 = vld [vmem:[%s754_s3 + $0x30] sm:$0xff]  ;;  %v201_v24 = vld [vmem:[%s754_s3 + $0x38] sm:$0xff]  ;;  %v38_v26 = vld [vmem:[%s752_s1 + $0x48] sm:$0xff]  ;;  %s534_s13 = scalar_lea.vmem %s311_s12, 256  ;;  %p539_p1 = scmp.lt.s32.totalorder %s311_s12, %s311_s12 }
   0xc   :  { %v507_v27 = vpack.c.bf16 %v201_v24, %v200_v23  ;;  %v471_v28 = vpack.c.bf16 %v38_v26, %v37_v25  ;;  %v202_v29 = vld [vmem:[%s754_s3 + $0x40] sm:$0xff]  ;;  %v203_v30 = vld [vmem:[%s754_s3 + $0x48] sm:$0xff]  ;;  %v39_v31 = vld [vmem:[%s752_s1 + $0x50] sm:$0xff]  ;;  %p535_p0 = scmp.ne.s32.totalorder %s311_s12, %s534_s13  ;;  %p540_p2 = scmp.lt.s32.totalorder %s534_s13, %s534_s13 }
   0xd   :  { %458 = vmatpush3.bf16.xpose.msk.msra.mxu0 %vm602_vm1, %v453_v6  ;;  %v40_v32 = vld [vmem:[%s752_s1 + $0x58] sm:$0xff]  ;;  %v511_v33 = vpack.c.bf16 %v203_v30, %v202_v29  ;;  %v204_v35 = vld [vmem:[%s754_s3 + $0x50] sm:$0xff]  ;;  %v41_v37 = vld [vmem:[%s752_s1 + $0x60] sm:$0xff] }
   0xe   :  { %461 = vmatprep.subr.msk.bf16.mxu0 %vm602_vm1, %v459_v16  ;;  %v477_v34 = vpack.c.bf16 %v40_v32, %v39_v31  ;;  %v205_v36 = vld [vmem:[%s754_s3 + $0x58] sm:$0xff]  ;;  %v42_v38 = vld [vmem:[%s752_s1 + $0x68] sm:$0xff]  ;;  %v43_v41 = vld [vmem:[%s752_s1 + $0x70] sm:$0xff]  ;;  %p541_p3 = por %p540_p2, %p539_p1 }
   0xf   :  { %v515_v39 = vpack.c.bf16 %v205_v36, %v204_v35  ;;  %v483_v40 = vpack.c.bf16 %v42_v38, %v41_v37  ;;  %v44_v42 = vld [vmem:[%s752_s1 + $0x78] sm:$0xff]  ;;  %v28_v44 = vld [vmem:[%s751_s0 + $0x8] sm:$0xff]  ;;  %v206_v45 = vld [vmem:[%s754_s3 + $0x60] sm:$0xff] }
  0x10   :  { %502 = vmatpush3.bf16.xpose.msra.mxu1 %v499_v15  ;;  %v489_v43 = vpack.c.bf16 %v44_v42, %v43_v41  ;;  %v207_v46 = vld [vmem:[%s754_s3 + $0x68] sm:$0xff]  ;;  %v208_v48 = vld [vmem:[%s754_s3 + $0x70] sm:$0xff]  ;;  %v209_v49 = vld [vmem:[%s754_s3 + $0x78] sm:$0xff]  ;;  %p542_p4 = pnand %p541_p3, %p535_p0 }
  0x11   :  { %504 = vmatprep.subr.bf16.mxu1 %v503_v21  ;;  %v519_v47 = vpack.c.bf16 %v207_v46, %v206_v45  ;;  %v523_v50 = vpack.c.bf16 %v209_v49, %v208_v48  ;;  %v321_v51 = vld [vmem:[%s753_s2] ss:$0 sm:$0xff] }
  0x12   :  { %v340_v2 = vld [vmem:[%s755_s4] ss:$0 sm:$0xff] }
  0x15   :  { %464 = vmatpush3.bf16.xpose.msk.msra.mxu0 %vm602_vm1, %v459_v16 }
  0x16   :  { %467 = vmatprep.subr.msk.bf16.mxu0 %vm602_vm1, %v465_v22 }
  0x18   :  { %506 = vmatpush3.bf16.xpose.msra.mxu1 %v503_v21 }
  0x19   :  { %508 = vmatprep.subr.bf16.mxu1 %v507_v27 }
  0x1d   :  { %470 = vmatpush3.bf16.xpose.msk.msra.mxu0 %vm602_vm1, %v465_v22 }
  0x1e   :  { %473 = vmatprep.subr.msk.bf16.mxu0 %vm602_vm1, %v471_v28 }
  0x20   :  { %510 = vmatpush3.bf16.xpose.msra.mxu1 %v507_v27 }
  0x21   :  { %512 = vmatprep.subr.bf16.mxu1 %v511_v33 }
  0x25   :  { %476 = vmatpush3.bf16.xpose.msk.msra.mxu0 %vm602_vm1, %v471_v28 }
  0x26   :  { %479 = vmatprep.subr.msk.bf16.mxu0 %vm602_vm1, %v477_v34 }
  0x28   :  { %514 = vmatpush3.bf16.xpose.msra.mxu1 %v511_v33 }
  0x29   :  { %516 = vmatprep.subr.bf16.mxu1 %v515_v39 }
  0x2d   :  { %482 = vmatpush3.bf16.xpose.msk.msra.mxu0 %vm602_vm1, %v477_v34 }
  0x2e   :  { %485 = vmatprep.subr.msk.bf16.mxu0 %vm602_vm1, %v483_v40 }
  0x30   :  { %518 = vmatpush3.bf16.xpose.msra.mxu1 %v515_v39 }
  0x31   :  { %520 = vmatprep.subr.bf16.mxu1 %v519_v47 }
  0x35   :  { %488 = vmatpush3.bf16.xpose.msk.msra.mxu0 %vm602_vm1, %v483_v40 }
  0x36   :  { %491 = vmatprep.subr.msk.bf16.mxu0 %vm602_vm1, %v489_v43 }
  0x38   :  { %522 = vmatpush3.bf16.xpose.msra.mxu1 %v519_v47 }
  0x39   :  { %524 = vmatprep.subr.bf16.mxu1 %v523_v50 }
  0x3d   :  { %494 = vmatpush3.bf16.xpose.msk.msra.mxu0 %vm602_vm1, %v489_v43 }
  0x40   :  { %526 = vmatpush3.bf16.xpose.msra.mxu1 %v523_v50 }
  0x44   :  { %410 = vmatmul.mubr.msk.f32.vlgmr.msra.gmra.mrb[0].mxu0 %vm52_vm0, %v28_v44 }
 0x117   :  { %v411_v52 = vpop.f32.mrb[0].mxu0 }
 0x118   :  { %v179_v53 = vadd.f32 %v411_v52, %v321_v51  ;;  %v173_v54 = vpop.f32.mrb[1].mxu0 }
 0x119   :  { %v174_v55 = vadd.f32 %v321_v51, %v173_v54 }
 0x11a   :  { %v185_v56 = vmul.f32 0.70710677, %v179_v53  ;;  %v183_v63 = vmul.f32 0.5, %v179_v53 }
 0x11b   :  { %v184_v57 = vmul.f32 0.70710677, %v174_v55  ;;  %v182_v61 = vmul.f32 0.5, %v174_v55 }
 0x11c   :  { %530 = verf.f32 %v185_v56 }
 0x11d   :  { %532 = verf.f32 %v184_v57 }
 0x126   :  { %v531_v58 = vpop.eup %530 }
 0x127   :  { %v533_v59 = vpop.eup %532  ;;  %v189_v60 = vadd.f32 1.0, %v531_v58 }
 0x128   :  { %v188_v62 = vadd.f32 1.0, %v533_v59 }
 0x129   :  { %v191_v1 = vmul.f32 %v189_v60, %v183_v63 }
 0x12a   :  { %v190_v0 = vmul.f32 %v188_v62, %v182_v61 }
 0x12c   :  { %444 = vmatprep.mubr.f32.mxu1 %v190_v0 }
 0x12d   :  { %445 = vmatmul.mubr.f32.vlgmr.msra.gmra.mrb[0].mxu1 %v191_v1 }
 0x200   :  { %v446_v3 = vpop.f32.mrb[0].mxu1 }
 0x201   :  { %v302_v4 = vadd.f32 %v446_v3, %v340_v2  ;;  %v276_v5 = vpop.f32.mrb[1].mxu1 }
 0x202   :  { %v301_v6 = vadd.f32 %v340_v2, %v276_v5 }
 0x203   :  { %304 = vst [vmem:[#allocation3 + $0x8] sm:$0xff] %v302_v4 }
 0x204   :  { %303 = vst [vmem:[#allocation3] sm:$0xff] %v301_v6 }
 0x205   :  { %545 = shalt.err (!%p542_p4)
}
 0x206   :  { %s546_s4 = scalar_lea.hbm %s756_s5, 256 }
 0x207   :  { %p547_p5 = scmp.ne.s32.totalorder %s756_s5, %s546_s4  ;;  %p550_p6 = scmp.lt.u32.totalorder %s546_s4, %s756_s5 }
 0x209   :  { %p552_p7 = pnand %p550_p6, %p547_p5 }
 0x20b   :  { %555 = shalt.err (!%p552_p7)
}
 0x20c   :  { %s559_s20 = smov 128   ;;  %s560_s21 = smov 8  }
 0x20d   :  { %316 = dma.vmem_to_hbm [thread:$0]  %s311_s12, 256, %s756_s5, [#allocation4], %s559_s20, %s559_s20, %s560_s21  }
 0x20e   :  { %556 = dma.done.wait [#allocation4], 256  }
 0x20f   :  { %557 = vsyncadd [#allocation4], 4294967040 }
 0x210   :  { %320 = vsyncpa [#allocation4], 1 }

</bundles_post_ra>
